<compile_context>
chip_gen: v5e
topology: v5e:2x2
jax: 0.10.0
libtpu: 0.0.40
codegen_flags: <defaults>
</compile_context>

<pallas_src>
import functools
import math

import jax
import jax.numpy as jnp
from jax.experimental import pallas as pl
from jax.experimental.pallas import tpu as pltpu


def _cdiv(a, b):
    return -(-a // b)


def _round_up(x, m):
    return _cdiv(x, m) * m


def _choose_batch_tile(batch, n_tasks, batch_tile):
    """Pick the lane-axis batch tile (multiple of 128)."""
    b128 = _round_up(batch, 128)
    tb = min(_round_up(batch_tile, 128), b128)
    # Re-balance so the tiles (nearly) divide the batch: avoids a large jnp.pad
    # copy and wasted lanes in the last tile.
    n_tiles = _cdiv(b128, tb)
    tb = _round_up(_cdiv(b128, n_tiles), 128)
    # v7x megacore: a single-task call should still yield >= 2 grid steps so
    # both TensorCores get work.
    if n_tasks == 1 and b128 >= 256 and _cdiv(b128, tb) < 2:
        tb = _round_up(_cdiv(b128, 2), 128)
    return tb


def _mlp_kernel(task_type, n_layers, *refs):
    """Fused MLP in transposed (feature-major, batch-on-lanes) layout.

    refs = (x_ref, w1_ref, b1_ref, ..., wL_ref, bL_ref, o_ref)
      x_ref : (n_in, TB)          compute dtype (cast to f32 once inside)
      wl_ref: (out_l, in_l)       float32 (pre-transposed, VMEM-resident)
      bl_ref: (out_l, 1)          float32
      o_ref : (n_out_total, TB)   out dtype
    """
    x_ref = refs[0]
    o_ref = refs[-1]
    wb = refs[1:-1]

    # Single cheap cast of the (n_in, TB) input tile; everything downstream
    # (matmul accumulate, bias add, ReLU, cos/sin) stays in f32.
    h = x_ref[...].astype(jnp.float32)
    for l in range(n_layers):
        w_ref, b_ref = wb[2 * l], wb[2 * l + 1]
        h = jnp.dot(w_ref[...], h, preferred_element_type=jnp.float32) + b_ref[...]
        if l < n_layers - 1:
            h = jnp.maximum(h, 0.0)          # ReLU on hidden layers
    y = h                                    # (n_head, TB) float32

    st = lambda v: v.astype(o_ref.dtype)

    if task_type == "sine":
        o_ref[...] = st(y)
    elif task_type == "acrobot":
        y2 = y[0:2, :]
        c = jnp.cos(y2)                      # paired cos/sin: 2 EUP calls, not 4
        s = jnp.sin(y2)
        o_ref[0:1, :] = st(c[0:1, :])
        o_ref[1:2, :] = st(s[0:1, :])
        o_ref[2:3, :] = st(c[1:2, :])
        o_ref[3:4, :] = st(s[1:2, :])
        o_ref[4:6, :] = st(y2)
    elif task_type == "pendulum":
        y1 = y[0:1, :]
        o_ref[0:1, :] = st(jnp.cos(y1))
        o_ref[1:2, :] = st(jnp.sin(y1))
        o_ref[2:3, :] = st(y1)
    else:
        raise ValueError(task_type)


def meta_player_forward_tasks(x, stacked_params, task_type="sine", *,
                              compute_dtype=jnp.float32, batch_tile=32768,
                              out_dtype=jnp.float32, vmem_limit_bytes=None,
                              feature_major_in=False, feature_major_out=False):
    """Forward for T MAML tasks fused into a single pallas_call.

    x:              (T, B, n_inputs) float32            (or (T, n_inputs, B) if
                                                          feature_major_in=True)
    stacked_params: list of (W_l, b_l) with W_l (T, in_l, out_l), b_l (T, 1, out_l)
    returns:        (T, B, n_out_total)                 (or (T, n_out_total, B_eff)
                                                          if feature_major_out=True)

    Call under jax.jit so the input cast/transpose/pad and output transpose fuse
    into the surrounding graph, or use feature_major_in/out to skip them.
    compute_dtype only affects the streamed input x (weights/biases stay f32).
    """
    if feature_major_in:
        T, n_in, B = x.shape
        xT = x.astype(compute_dtype)                               # (T, n_in, B)
    else:
        T, B, n_in = x.shape
        xT = jnp.swapaxes(x, 1, 2).astype(compute_dtype)           # (T, n_in, B)

    n_layers = len(stacked_params)
    n_head = stacked_params[-1][0].shape[-1]
    n_out_total = {"sine": n_head, "acrobot": 6, "pendulum": 3}[task_type]

    TB = _choose_batch_tile(B, T, batch_tile)
    B_pad = _round_up(B, TB)
    if B_pad != B:
        xT = jnp.pad(xT, ((0, 0), (0, 0), (0, B_pad - B)))

    flat_args = [xT]
    in_specs = [pl.BlockSpec((None, n_in, TB), lambda t, i: (t, 0, i))]
    for (w, b) in stacked_params:
        # Weights/biases are tiny and VMEM-resident across all batch tiles of a
        # task -> keep them in f32 (no precision loss, no per-layer casts).
        wT = jnp.swapaxes(w, 1, 2).astype(jnp.float32)             # (T, out, in)
        bT = jnp.swapaxes(b, 1, 2).astype(jnp.float32)             # (T, out, 1)
        flat_args += [wT, bT]
        in_specs += [
            pl.BlockSpec((None,) + wT.shape[1:], lambda t, i: (t, 0, 0)),
            pl.BlockSpec((None,) + bT.shape[1:], lambda t, i: (t, 0, 0)),
        ]

    # Advisory cost estimate so XLA schedules neighbors of the custom call well.
    layer_dims = [(int(w.shape[1]), int(w.shape[2])) for (w, _) in stacked_params]
    flops = 2 * T * B_pad * sum(i * o for i, o in layer_dims)
    transcendentals = T * B_pad * {"sine": 0, "acrobot": 4, "pendulum": 2}[task_type]
    param_bytes = sum(int(w.size) * 4 + int(b.size) * 4 for (w, b) in stacked_params)
    bytes_accessed = (int(xT.size) * jnp.dtype(compute_dtype).itemsize
                      + T * n_out_total * B_pad * jnp.dtype(out_dtype).itemsize
                      + param_bytes)
    cost = pl.CostEstimate(flops=flops, transcendentals=transcendentals,
                           bytes_accessed=bytes_accessed)

    cp_kwargs = dict(dimension_semantics=("parallel", "parallel"))
    if vmem_limit_bytes is not None:
        # Only needed when pushing TB past ~64K lanes (v6e/v5e headroom).
        cp_kwargs["vmem_limit_bytes"] = vmem_limit_bytes

    yT = pl.pallas_call(
        functools.partial(_mlp_kernel, task_type, n_layers),
        out_shape=jax.ShapeDtypeStruct((T, n_out_total, B_pad), out_dtype),
        grid=(T, B_pad // TB),
        in_specs=in_specs,
        out_specs=pl.BlockSpec((None, n_out_total, TB), lambda t, i: (t, 0, i)),
        compiler_params=pltpu.CompilerParams(**cp_kwargs),
        cost_estimate=cost,
    )(*flat_args)

    if feature_major_out:
        return yT[:, :, :B] if B_pad != B else yT                  # (T, n_out, B)
    return jnp.swapaxes(yT, 1, 2)[:, :B, :]                        # (T, B, n_out)


def meta_player_forward(x, params, task_type="sine", **kwargs):
    """Single-module forward. x: (B, n_inputs); params: list of (W (in,out), b (1,out))."""
    stacked = [(w[None], b[None]) for (w, b) in params]
    y = meta_player_forward_tasks(x[None], stacked, task_type, **kwargs)
    return y[0]


def init_meta_player_params(key, n_inputs, n_outputs, n_weights, task_type="sine"):
    """Deterministic re-implementation of Meta_Player._reset_parameters."""
    if task_type == "sine":
        nodes_per_layer = list(n_weights) + [n_outputs]
    elif task_type == "acrobot":
        nodes_per_layer = list(n_weights) + [n_outputs - 2]
    elif task_type == "pendulum":
        nodes_per_layer = list(n_weights) + [n_outputs - 1]
    else:
        raise ValueError(task_type)

    params = []
    prev = n_inputs
    for nodes in nodes_per_layer:
        stdv = 1.0 / math.sqrt(nodes)
        key, kw, kb = jax.random.split(key, 3)
        w = jax.random.uniform(kw, (prev, nodes), jnp.float32, -stdv, stdv)
        b = jax.random.uniform(kb, (1, nodes), jnp.float32, -stdv, stdv)
        params.append((w, b))
        prev = nodes
    return params


def _reference_forward(x, params, task_type="sine"):
    """Pure-JAX reference mirroring the PyTorch forward."""
    h = x
    for (w, b) in params[:-1]:
        h = jax.nn.relu(h @ w + b)
    w, b = params[-1]
    y = h @ w + b
    if task_type == "sine":
        return y
    elif task_type == "acrobot":
        return jnp.concatenate(
            (jnp.cos(y[..., 0:1]), jnp.sin(y[..., 0:1]),
             jnp.cos(y[..., 1:2]), jnp.sin(y[..., 1:2]), y[..., :2]), axis=-1)
    elif task_type == "pendulum":
        return jnp.concatenate(
            (jnp.cos(y[..., 0:1]), jnp.sin(y[..., 0:1]), y[..., :1]), axis=-1)
    raise ValueError(task_type)


if __name__ == "__main__":
    key = jax.random.PRNGKey(0)
    n_inputs, n_weights, batch = 4, [32, 32], 8

    # --- sine head, exact f32 path (jitted wrapper: layout ops fuse into graph) ---
    n_outputs = 2
    key, kp, kx = jax.random.split(key, 3)
    params = init_meta_player_params(kp, n_inputs, n_outputs, n_weights, "sine")
    x = jax.random.normal(kx, (batch, n_inputs), jnp.float32)
    sine_fwd = jax.jit(functools.partial(meta_player_forward, task_type="sine"))
    y = jax.block_until_ready(sine_fwd(x, params))
    y_ref = _reference_forward(x, params, "sine")
    assert y.shape == (batch, n_outputs)
    assert jnp.allclose(y, y_ref, atol=1e-5, rtol=1e-5)

    # --- acrobot / pendulum heads (fused in-kernel paired cos/sin epilogue) ---
    for task_type, n_out in (("acrobot", 6), ("pendulum", 3)):
        key, kp, kx = jax.random.split(key, 3)
        p = init_meta_player_params(kp, n_inputs, n_out, n_weights, task_type)
        xt = jax.random.normal(kx, (batch, n_inputs), jnp.float32)
        fwd = jax.jit(functools.partial(meta_player_forward, task_type=task_type))
        yt = jax.block_until_ready(fwd(xt, p))
        yt_ref = _reference_forward(xt, p, task_type)
        assert yt.shape == (batch, n_out)
        assert jnp.allclose(yt, yt_ref, atol=1e-5, rtol=1e-5)

    # --- single task, larger batch: exercises batch tiling / megacore split ---
    key, kx = jax.random.split(key)
    xb_big = jax.random.normal(kx, (300, n_inputs), jnp.float32)
    yb_big = jax.block_until_ready(sine_fwd(xb_big, params))
    yb_big_ref = _reference_forward(xb_big, params, "sine")
    assert yb_big.shape == (300, n_outputs)
    assert jnp.allclose(yb_big, yb_big_ref, atol=1e-5, rtol=1e-5)

    # --- multi-task fused call, bf16 streamed input (weights/activations stay f32) ---
    T = 3
    keys = jax.random.split(jax.random.PRNGKey(1), T + 1)
    task_params = [init_meta_player_params(k, n_inputs, 2, n_weights, "sine")
                   for k in keys[:T]]
    stacked = [
        (jnp.stack([task_params[t][l][0] for t in range(T)]),
         jnp.stack([task_params[t][l][1] for t in range(T)]))
        for l in range(len(n_weights) + 1)
    ]
    xb = jax.random.normal(keys[T], (T, batch, n_inputs), jnp.float32)
    multi_fwd = jax.jit(functools.partial(meta_player_forward_tasks,
                                          task_type="sine",
                                          compute_dtype=jnp.bfloat16))
    yb = jax.block_until_ready(multi_fwd(xb, stacked))
    yb_ref = jnp.stack([_reference_forward(xb[t], task_params[t], "sine")
                        for t in range(T)])
    assert yb.shape == (T, batch, 2)
    assert jnp.allclose(yb, yb_ref, atol=5e-2, rtol=5e-2)

    print("KERNEL_OK")
</pallas_src>

<mosaic_0001>
module attributes {stable_mosaic.version = 11 : i64} {
  func.func @_mlp_kernel(%arg0: i32, %arg1: i32, %arg2: memref<1x4x128xf32, #tpu.memory_space<vmem>>, %arg3: memref<1x32x4xf32, #tpu.memory_space<vmem>>, %arg4: memref<1x32x1xf32, #tpu.memory_space<vmem>>, %arg5: memref<1x32x32xf32, #tpu.memory_space<vmem>>, %arg6: memref<1x32x1xf32, #tpu.memory_space<vmem>>, %arg7: memref<1x2x32xf32, #tpu.memory_space<vmem>>, %arg8: memref<1x2x1xf32, #tpu.memory_space<vmem>>, %arg9: memref<1x2x128xf32, #tpu.memory_space<vmem>>) attributes {dimension_semantics = [#tpu.dimension_semantics<parallel>, #tpu.dimension_semantics<parallel>], iteration_bounds = array<i64: 1, 1>, scalar_prefetch = 0 : i64, scratch_operands = 0 : i64, tpu.core_type = #tpu.core_type<tc>, window_params = [{transform_indices = @transform_0, window_bounds = array<i64: 1, 4, 128>}, {transform_indices = @transform_1, window_bounds = array<i64: 1, 32, 4>}, {transform_indices = @transform_2, window_bounds = array<i64: 1, 32, 1>}, {transform_indices = @transform_3, window_bounds = array<i64: 1, 32, 32>}, {transform_indices = @transform_4, window_bounds = array<i64: 1, 32, 1>}, {transform_indices = @transform_5, window_bounds = array<i64: 1, 2, 32>}, {transform_indices = @transform_6, window_bounds = array<i64: 1, 2, 1>}, {transform_indices = @transform_7, window_bounds = array<i64: 1, 2, 128>}]} {
    %c0 = arith.constant 0 : index
    %c0_0 = arith.constant 0 : index
    %c0_1 = arith.constant 0 : index
    %0 = vector.load %arg2[%c0, %c0_0, %c0_1] : memref<1x4x128xf32, #tpu.memory_space<vmem>>, vector<1x4x128xf32>
    %1 = vector.shape_cast %0 : vector<1x4x128xf32> to vector<4x128xf32>
    %c0_2 = arith.constant 0 : index
    %c0_3 = arith.constant 0 : index
    %c0_4 = arith.constant 0 : index
    %2 = vector.load %arg3[%c0_2, %c0_3, %c0_4] : memref<1x32x4xf32, #tpu.memory_space<vmem>>, vector<1x32x4xf32>
    %3 = vector.shape_cast %2 : vector<1x32x4xf32> to vector<32x4xf32>
    %cst = arith.constant dense<0.000000e+00> : vector<32x128xf32>
    %4 = tpu.matmul %3, %1, %cst {dimension_numbers = #tpu.dot_dimension_numbers<[1], [0], [0], [1], [0, 0, 1, 1], [], []>} : vector<32x4xf32>, vector<4x128xf32>, vector<32x128xf32> -> vector<32x128xf32>
    %c0_5 = arith.constant 0 : index
    %c0_6 = arith.constant 0 : index
    %c0_7 = arith.constant 0 : index
    %5 = vector.load %arg4[%c0_5, %c0_6, %c0_7] : memref<1x32x1xf32, #tpu.memory_space<vmem>>, vector<1x32x1xf32>
    %6 = vector.shape_cast %5 : vector<1x32x1xf32> to vector<32x1xf32>
    %7 = vector.broadcast %6 : vector<32x1xf32> to vector<32x128xf32>
    %8 = arith.addf %4, %7 : vector<32x128xf32>
    %cst_8 = arith.constant 0.000000e+00 : f32
    %9 = vector.broadcast %cst_8 : f32 to vector<32x128xf32>
    %10 = arith.maximumf %8, %9 : vector<32x128xf32>
    %c0_9 = arith.constant 0 : index
    %c0_10 = arith.constant 0 : index
    %c0_11 = arith.constant 0 : index
    %11 = vector.load %arg5[%c0_9, %c0_10, %c0_11] : memref<1x32x32xf32, #tpu.memory_space<vmem>>, vector<1x32x32xf32>
    %12 = vector.shape_cast %11 : vector<1x32x32xf32> to vector<32x32xf32>
    %cst_12 = arith.constant dense<0.000000e+00> : vector<32x128xf32>
    %13 = tpu.matmul %12, %10, %cst_12 {dimension_numbers = #tpu.dot_dimension_numbers<[1], [0], [0], [1], [0, 0, 1, 1], [], []>} : vector<32x32xf32>, vector<32x128xf32>, vector<32x128xf32> -> vector<32x128xf32>
    %c0_13 = arith.constant 0 : index
    %c0_14 = arith.constant 0 : index
    %c0_15 = arith.constant 0 : index
    %14 = vector.load %arg6[%c0_13, %c0_14, %c0_15] : memref<1x32x1xf32, #tpu.memory_space<vmem>>, vector<1x32x1xf32>
    %15 = vector.shape_cast %14 : vector<1x32x1xf32> to vector<32x1xf32>
    %16 = vector.broadcast %15 : vector<32x1xf32> to vector<32x128xf32>
    %17 = arith.addf %13, %16 : vector<32x128xf32>
    %cst_16 = arith.constant 0.000000e+00 : f32
    %18 = vector.broadcast %cst_16 : f32 to vector<32x128xf32>
    %19 = arith.maximumf %17, %18 : vector<32x128xf32>
    %c0_17 = arith.constant 0 : index
    %c0_18 = arith.constant 0 : index
    %c0_19 = arith.constant 0 : index
    %20 = vector.load %arg7[%c0_17, %c0_18, %c0_19] : memref<1x2x32xf32, #tpu.memory_space<vmem>>, vector<1x2x32xf32>
    %21 = vector.shape_cast %20 : vector<1x2x32xf32> to vector<2x32xf32>
    %cst_20 = arith.constant dense<0.000000e+00> : vector<2x128xf32>
    %22 = tpu.matmul %21, %19, %cst_20 {dimension_numbers = #tpu.dot_dimension_numbers<[1], [0], [0], [1], [0, 0, 1, 1], [], []>} : vector<2x32xf32>, vector<32x128xf32>, vector<2x128xf32> -> vector<2x128xf32>
    %c0_21 = arith.constant 0 : index
    %c0_22 = arith.constant 0 : index
    %c0_23 = arith.constant 0 : index
    %23 = vector.load %arg8[%c0_21, %c0_22, %c0_23] : memref<1x2x1xf32, #tpu.memory_space<vmem>>, vector<1x2x1xf32>
    %24 = vector.shape_cast %23 : vector<1x2x1xf32> to vector<2x1xf32>
    %25 = vector.broadcast %24 : vector<2x1xf32> to vector<2x128xf32>
    %26 = arith.addf %22, %25 : vector<2x128xf32>
    %c0_24 = arith.constant 0 : index
    %c0_25 = arith.constant 0 : index
    %c0_26 = arith.constant 0 : index
    %27 = vector.load %arg9[%c0_24, %c0_25, %c0_26] : memref<1x2x128xf32, #tpu.memory_space<vmem>>, vector<1x2x128xf32>
    %28 = vector.shape_cast %27 : vector<1x2x128xf32> to vector<2x128xf32>
    %29 = vector.shape_cast %26 : vector<2x128xf32> to vector<1x2x128xf32>
    tpu.vector_store %arg9[%c0_24, %c0_25, %c0_26], %29 {strides = array<i32>} : memref<1x2x128xf32, #tpu.memory_space<vmem>>, vector<1x2x128xf32>,
    return
  }
  func.func @transform_0(%arg0: i32, %arg1: i32) -> (i32, i32, i32) {
    %c0_i32 = arith.constant 0 : i32
    %c0_i32_0 = arith.constant 0 : i32
    return %arg0, %c0_i32, %arg1 : i32, i32, i32
  }
  func.func @transform_1(%arg0: i32, %arg1: i32) -> (i32, i32, i32) {
    %c0_i32 = arith.constant 0 : i32
    %c0_i32_0 = arith.constant 0 : i32
    %c0_i32_1 = arith.constant 0 : i32
    return %arg0, %c0_i32, %c0_i32_0 : i32, i32, i32
  }
  func.func @transform_2(%arg0: i32, %arg1: i32) -> (i32, i32, i32) {
    %c0_i32 = arith.constant 0 : i32
    %c0_i32_0 = arith.constant 0 : i32
    %c0_i32_1 = arith.constant 0 : i32
    return %arg0, %c0_i32, %c0_i32_0 : i32, i32, i32
  }
  func.func @transform_3(%arg0: i32, %arg1: i32) -> (i32, i32, i32) {
    %c0_i32 = arith.constant 0 : i32
    %c0_i32_0 = arith.constant 0 : i32
    %c0_i32_1 = arith.constant 0 : i32
    return %arg0, %c0_i32, %c0_i32_0 : i32, i32, i32
  }
  func.func @transform_4(%arg0: i32, %arg1: i32) -> (i32, i32, i32) {
    %c0_i32 = arith.constant 0 : i32
    %c0_i32_0 = arith.constant 0 : i32
    %c0_i32_1 = arith.constant 0 : i32
    return %arg0, %c0_i32, %c0_i32_0 : i32, i32, i32
  }
  func.func @transform_5(%arg0: i32, %arg1: i32) -> (i32, i32, i32) {
    %c0_i32 = arith.constant 0 : i32
    %c0_i32_0 = arith.constant 0 : i32
    %c0_i32_1 = arith.constant 0 : i32
    return %arg0, %c0_i32, %c0_i32_0 : i32, i32, i32
  }
  func.func @transform_6(%arg0: i32, %arg1: i32) -> (i32, i32, i32) {
    %c0_i32 = arith.constant 0 : i32
    %c0_i32_0 = arith.constant 0 : i32
    %c0_i32_1 = arith.constant 0 : i32
    return %arg0, %c0_i32, %c0_i32_0 : i32, i32, i32
  }
  func.func @transform_7(%arg0: i32, %arg1: i32) -> (i32, i32, i32) {
    %c0_i32 = arith.constant 0 : i32
    %c0_i32_0 = arith.constant 0 : i32
    return %arg0, %c0_i32, %arg1 : i32, i32, i32
  }
}

</mosaic_0001>

<bundles_post_ra>
// kernel: meta_player_forward.1
= control target key start
LH: loop header
LB: loop body
LE: loop exit
PB: predicated region body
PF: predicated region fallthrough
CT: control target
= control target key end

     0   :  { %vm68_vm0 = vcmask 1043456   ;;  %vm55_vm1 = vcmask 31744   ;;  %v233_v2 = vmov 0   ;;  %vm133_vm2 = vcmask 261120   ;;  %s343_s0 = inlined_call_operand.vmem [shape: f32[1,4,128], index: 0, kind: input, shape index: {}]   ;;  %s344_s1 = inlined_call_operand.vmem [shape: f32[1,32,4], index: 1, kind: input, shape index: {}]   ;;  %s345_s2 = inlined_call_operand.vmem [shape: f32[1,32,1], index: 2, kind: input, shape index: {}]   ;;  %s346_s4 = inlined_call_operand.vmem [shape: f32[1,32,1], index: 4, kind: input, shape index: {}]   ;;  %s347_s6 = inlined_call_operand.vmem [shape: f32[1,2,1], index: 6, kind: input, shape index: {}]   ;;  %s348_s3 = inlined_call_operand.vmem [shape: f32[1,32,32], index: 3, kind: input, shape index: {}]   ;;  %s349_s5 = inlined_call_operand.vmem [shape: f32[1,2,32], index: 5, kind: input, shape index: {}]   ;;  %s350_s7 = inlined_call_operand.vmem [shape: f32[1,2,128], index: 7, kind: output, shape index: {}]  }
   0x1   :  { %v26_v0 = vld [vmem:[%s343_s0] sm:$0xf]  ;;  %231 = vset.pattern.permute.xlu1 %v233_v2  ;;  %230 = vset.pattern.permute.xlu0 %v233_v2  ;;  %v30_v3 = vld [vmem:[%s344_s1 + $0x18] sm:$0xff]  ;;  %v32_v5 = vld [vmem:[%s345_s2 + $0x8] sm:$0xff] }
   0x2   :  { %v27_v1 = vld [vmem:[%s344_s1] sm:$0xff]  ;;  %214 = vmatpush.msk.msra.mxu0 %vm68_vm0, %v26_v0  ;;  %224 = vmatpush.msk.msra.mxu2 %vm68_vm0, %v26_v0  ;;  %v34_v4 = vld [vmem:[%s345_s2 + $0x18] sm:$0xff]  ;;  %v28_v6 = vld [vmem:[%s344_s1 + $0x8] sm:$0xff] }
   0x3   :  { %215 = vmatmul.msk.f32.vlgmr.msra.gmra.mxu0 %vm55_vm1, %v27_v1  ;;  %218 = vmatmul.msk.f32.vlgmr.msra.gmra.mxu2 %vm55_vm1, %v30_v3  ;;  %v33_v7 = vld [vmem:[%s345_s2 + $0x10] sm:$0xff]  ;;  %v31_v8 = vld [vmem:[%s345_s2] sm:$0xff]  ;;  %v110_v10 = vld [vmem:[%s346_s4 + $0x8] sm:$0xff] }
   0x4   :  { %52 = vperm.xlu0 %230, %v34_v4   ;;  %42 = vperm.xlu1 %231, %v32_v5   ;;  %v29_v9 = vld [vmem:[%s344_s1 + $0x10] sm:$0xff]  ;;  %v109_v11 = vld [vmem:[%s346_s4] sm:$0xff]  ;;  %v112_v13 = vld [vmem:[%s346_s4 + $0x18] sm:$0xff] }
   0x5   :  { %232 = vset.pattern.permute.xlu2 %v233_v2  ;;  %v111_v20 = vld [vmem:[%s346_s4 + $0x10] sm:$0xff]  ;;  %v180_v26 = vld [vmem:[%s347_s6] sm:$0x3]  ;;  %v106_v33 = vld [vmem:[%s348_s3 + $0x8] sm:$0xff] }
   0x6   :  { %130 = vperm.xlu2 %232, %v112_v13   ;;  %v105_v31 = vld [vmem:[%s348_s3] sm:$0xff]  ;;  %v107_v32 = vld [vmem:[%s348_s3 + $0x10] sm:$0xff]  ;;  %v108_v34 = vld [vmem:[%s348_s3 + $0x18] sm:$0xff] }
   0x7   :  { %v179_v51 = vld [vmem:[%s349_s5] sm:$0x3] }
   0xb   :  { %216 = vmatmul.msk.f32.gmra.mxu0 %vm55_vm1, %v28_v6 }
   0xc   :  { %47 = vperm.xlu0 %230, %v33_v7   ;;  %37 = vperm.xlu1 %231, %v31_v8  }
   0xe   :  { %125 = vperm.xlu2 %232, %v111_v20  }
  0x13   :  { %217 = vmatmul.msk.f32.gmra.mxu0 %vm55_vm1, %v29_v9 }
  0x14   :  { %120 = vperm.xlu0 %230, %v110_v10   ;;  %115 = vperm.xlu1 %231, %v109_v11  }
  0x16   :  { %183 = vperm.xlu2 %232, %v180_v26  }
  0x60   :  { %v131_v35 = vpop.permute.xlu2 %130 }
  0x68   :  { %v126_v38 = vpop.permute.xlu2 %125 }
  0x70   :  { %v184_v52 = vpop.permute.xlu2 %183 }
  0x76   :  { %v53_v14 = vpop.permute.xlu0 %52  ;;  %v43_v15 = vpop.permute.xlu1 %42 }
  0x7e   :  { %v48_v21 = vpop.permute.xlu0 %47  ;;  %v38_v22 = vpop.permute.xlu1 %37 }
  0x80   :  { %v89_v12 = vpop.f32.mrf.mxu0 }
  0x81   :  { %v90_v27 = vadd.f32 %v89_v12, %v38_v22 }
  0x83   :  { %v101_v30 = vmax.f32 %v90_v27, 0.0 }
  0x86   :  { %v98_v16 = vpop.f32.mrf.mxu2  ;;  %v121_v43 = vpop.permute.xlu0 %120 }
  0x87   :  { %v99_v17 = vadd.f32 %v98_v16, %v53_v14  ;;  %v116_v46 = vpop.permute.xlu1 %115 }
  0x88   :  { %v92_v18 = vpop.f32.mrf.mxu0 }
  0x89   :  { %v104_v19 = vmax.f32 %v99_v17, 0.0  ;;  %v93_v24 = vadd.f32 %v92_v18, %v43_v15 }
  0x8b   :  { %158 = vmatpush.msra.mxu1 %v104_v19  ;;  %225 = vmatpush.msra.mxu3 %v104_v19  ;;  %v102_v29 = vmax.f32 %v93_v24, 0.0 }
  0x90   :  { %v95_v23 = vpop.f32.mrf.mxu0 }
  0x91   :  { %v96_v25 = vadd.f32 %v95_v23, %v48_v21 }
  0x93   :  { %v103_v28 = vmax.f32 %v96_v25, 0.0 }
  0x95   :  { %159 = vmatpush.msra.mxu1 %v103_v28  ;;  %226 = vmatpush.msra.mxu3 %v103_v28 }
  0x97   :  { %160 = vmatpush.msra.mxu1 %v102_v29  ;;  %227 = vmatpush.msra.mxu3 %v102_v29 }
  0x99   :  { %161 = vmatpush.msra.mxu1 %v101_v30  ;;  %228 = vmatpush.msra.mxu3 %v101_v30 }
  0x9a   :  { %219 = vmatmul.msk.f32.vlgmr.msra.gmra.mxu1 %vm133_vm2, %v105_v31  ;;  %221 = vmatmul.msk.f32.vlgmr.msra.gmra.mxu3 %vm133_vm2, %v107_v32 }
  0xa2   :  { %220 = vmatmul.msk.f32.gmra.mxu1 %vm133_vm2, %v106_v33  ;;  %222 = vmatmul.msk.f32.gmra.mxu3 %vm133_vm2, %v108_v34 }
 0x117   :  { %v163_v36 = vpop.f32.mrf.mxu1 }
 0x118   :  { %v164_v47 = vadd.f32 %v163_v36, %v116_v46 }
 0x11a   :  { %v175_v50 = vmax.f32 %v164_v47, 0.0 }
 0x11d   :  { %v169_v37 = vpop.f32.mrf.mxu3 }
 0x11e   :  { %v170_v41 = vadd.f32 %v169_v37, %v126_v38 }
 0x11f   :  { %v166_v39 = vpop.f32.mrf.mxu1 }
 0x120   :  { %v167_v44 = vadd.f32 %v166_v39, %v121_v43  ;;  %v177_v48 = vmax.f32 %v170_v41, 0.0 }
 0x122   :  { %v176_v49 = vmax.f32 %v167_v44, 0.0 }
 0x125   :  { %v172_v40 = vpop.f32.mrf.mxu3 }
 0x126   :  { %v173_v42 = vadd.f32 %v172_v40, %v131_v35 }
 0x128   :  { %v178_v45 = vmax.f32 %v173_v42, 0.0 }
 0x12a   :  { %201 = vmatpush.msrb.mxu2 %v178_v45 }
 0x12c   :  { %202 = vmatpush.msrb.mxu2 %v177_v48 }
 0x12e   :  { %203 = vmatpush.msrb.mxu2 %v176_v49 }
 0x130   :  { %204 = vmatpush.msrb.mxu2 %v175_v50 }
 0x131   :  { %223 = vmatmul.msk.f32.vlgmr.msrb.gmra.mxu2 %vm133_vm2, %v179_v51 }
 0x1b4   :  { %v206_v53 = vpop.f32.mrf.mxu2 }
 0x1b5   :  { %v207_v54 = vadd.f32 %v206_v53, %v184_v52 }
 0x1b7   :  { %209 = vst [vmem:[%s350_s7] sm:$0x3] %v207_v54 }

</bundles_post_ra>
